<compile_context>
chip_gen: v7x
topology: tpu7x:2x2x1
jax: 0.10.0
libtpu: 0.0.40
codegen_flags: <defaults>
</compile_context>

<pallas_src>
import functools
from itertools import permutations

import numpy as np
import jax
import jax.numpy as jnp
from jax import lax
from jax.experimental import pallas as pl
from jax.experimental.pallas import tpu as pltpu

EPS = 1e-8                      # matches asteroid's EPS inside PairwiseNegSDR("sisdr")
_NEG10_OVER_LN10 = -10.0 / float(np.log(10.0))   # -10*log10(x) = (-10/ln10)*ln(x)


def _round_up(x, m):
    return ((x + m - 1) // m) * m


def _bucket_time(T, t_tile):
    """(tile, padded length): power-of-two buckets up to t_tile, then multiples of t_tile,
    so one compiled kernel covers many utterance lengths."""
    t_tile = max(128, _round_up(t_tile, 128))
    if T <= t_tile:
        tt = 128
        while tt < T:
            tt *= 2
        tt = min(tt, t_tile)
        return tt, tt
    return t_tile, _round_up(T, t_tile)


def _col_to_row(col, n):
    """(n, 1) column -> (1, n) row without a transpose (iota eye-select + sublane reduce)."""
    r = lax.broadcasted_iota(jnp.int32, (n, n), 0)
    c = lax.broadcasted_iota(jnp.int32, (n, n), 1)
    eye = (r == c).astype(col.dtype)
    return jnp.sum(col * eye, axis=0, keepdims=True)


def _wpit_kernel(t_ref, slab_ref, w_ref, out_ref, acc_ref, sq_ref,
                 *, n_src, num_stages, sn_pad):
    k = pl.program_id(0)
    nk = pl.num_programs(0)
    n = n_src
    S = num_stages
    Snp = sn_pad                 # est rows padded to a multiple of 8 (sublane aligned)
    R = Snp + n + 1              # slab rows: est | src | ones
    nfact = w_ref.shape[-1]

    # ---- init accumulators on the first T-tile ----
    @pl.when(k == 0)
    def _init():
        acc_ref[...] = jnp.zeros_like(acc_ref)
        sq_ref[...] = jnp.zeros_like(sq_ref)

    whole = slab_ref[...]                    # (R, Tt)
    rhs = whole[Snp:R, :]                    # (n + 1, Tt): [src rows | ones row], aligned start

    # One MXU matmul per tile gives <est_i, src_j>, sum(est_i) and sum(src_j) at once:
    #   acc[0:Snp, 0:n]   pairwise dots     acc[0:Snp, n]   sum(est)
    #   acc[R-1,   0:n]   sum(src)          (rest unused)
    acc_ref[...] += lax.dot_general(whole, rhs, (((1,), (1,)), ((), ())),
                                    preferred_element_type=jnp.float32)
    # squared sums: est energies in rows [0, Snp), src energies in rows [Snp, Snp+n)
    sq_ref[...] += jnp.sum(whole * whole, axis=-1, keepdims=True)

    # ---- finalize on the last T-tile ----
    @pl.when(k == nk - 1)
    def _finalize():
        T = t_ref[0].astype(jnp.float32)     # true (un-padded) length, from SMEM
        inv_T = 1.0 / T
        acc = acc_ref[...]
        sq = sq_ref[...]

        pd = acc[0:Snp, 0:n]                         # <e, t>            (Snp, n)
        se = acc[0:Snp, n:n + 1]                     # sum e             (Snp, 1)
        st = acc[R - 1:R, 0:n]                       # sum t  (row)      (1, n)
        eq = sq[0:Snp, :]                            # sum e^2           (Snp, 1)
        tq = _col_to_row(sq[Snp:Snp + n, :], n)      # sum t^2 (row)     (1, n)

        # fold zero-mean algebraically (no second pass over the waveform)
        me = se * inv_T
        mt = st * inv_T
        pair = pd - T * (me * mt)                    # <e_zm, t_zm>
        est_e = eq - T * (me * me)                   # ||e_zm||^2
        tgt_e = tq - T * (mt * mt)                   # ||t_zm||^2

        inv_tgt = 1.0 / (tgt_e + EPS)
        scale = pair * inv_tgt
        proj_e = scale * scale * tgt_e               # ||proj||^2
        noise_e = jnp.maximum(est_e - 2.0 * scale * pair + proj_e, 0.0)
        pw = _NEG10_OVER_LN10 * jnp.log(proj_e / (noise_e + EPS) + EPS)   # (Snp, n) neg SI-SDR

        # ---- PIT over permutations via static one-hot selector table (n mul-adds) ----
        w = w_ref[...]                               # (n*Snp, nfact)
        per_all = pw[:, 0:1] * w[0:Snp, :]
        for j in range(1, n):
            per_all = per_all + pw[:, j:j + 1] * w[j * Snp:(j + 1) * Snp, :]   # (Snp, nfact)

        # sum the n sources of each stage (iota stage masks; padded est rows excluded)
        riota = lax.broadcasted_iota(jnp.int32, (Snp, nfact), 0)
        stage_rows = []
        for s in range(S):
            m = jnp.logical_and(riota >= s * n, riota < s * n + n).astype(jnp.float32)
            stage_rows.append(jnp.sum(per_all * m, axis=0, keepdims=True))     # (1, nfact)
        stage_perm = stage_rows[0] if S == 1 else jnp.concatenate(stage_rows, axis=0)

        sdr = jnp.min(stage_perm, axis=-1, keepdims=True) * (1.0 / n)          # (S, 1)
        out_ref[...] = _col_to_row(sdr, S)                                     # (1, S)


def weighted_pit_loss(est_src, logits, src, *, n_srcs=(2, 3, 4, 5), lamb=0.05,
                      t_tile=8192):
    est_src = jnp.asarray(est_src, jnp.float32)
    logits = jnp.asarray(logits, jnp.float32)
    src = jnp.asarray(src, jnp.float32)

    S, n, T = est_src.shape
    assert src.shape == (n, T)
    target_idx = {m: i for i, m in enumerate(n_srcs)}[n]

    Sn = S * n
    Snp = _round_up(Sn, 8)        # sublane-align the est block so the src slice is free
    R = Snp + n + 1

    Tt, T_pad = _bucket_time(T, t_tile)
    num_k = T_pad // Tt

    # fused slab: [est (Snp rows, zero padded) | src (n rows) | ones (1 row)], time zero-padded
    slab = jnp.zeros((R, T_pad), jnp.float32)
    slab = slab.at[:Sn, :T].set(est_src.reshape(Sn, T))
    slab = slab.at[Snp:Snp + n, :T].set(src)
    slab = slab.at[R - 1, :].set(1.0)

    # permutation one-hot selector table: W[j*Snp + row, p] = 1 iff perm_p[row % n] == j
    perms = list(permutations(range(n)))
    nfact = len(perms)
    w_np = np.zeros((n * Snp, nfact), np.float32)
    for row in range(Sn):
        i = row % n
        for p_idx, perm in enumerate(perms):
            w_np[perm[i] * Snp + row, p_idx] = 1.0
    w = jnp.asarray(w_np)

    t_true = jnp.full((1,), T, jnp.int32)

    kernel = functools.partial(_wpit_kernel, n_src=n, num_stages=S, sn_pad=Snp)

    out = pl.pallas_call(
        kernel,
        grid_spec=pltpu.PrefetchScalarGridSpec(
            num_scalar_prefetch=1,
            grid=(num_k,),
            in_specs=[
                pl.BlockSpec((R, Tt), lambda k, t: (0, k)),
                pl.BlockSpec((n * Snp, nfact), lambda k, t: (0, 0)),
            ],
            out_specs=pl.BlockSpec((1, S), lambda k, t: (0, 0)),
            scratch_shapes=[
                pltpu.VMEM((R, n + 1), jnp.float32),   # matmul accumulator (<e,t>, sum e, sum t)
                pltpu.VMEM((R, 1), jnp.float32),       # squared-sum accumulator
            ],
        ),
        out_shape=jax.ShapeDtypeStruct((1, S), jnp.float32),
        compiler_params=pltpu.CompilerParams(
            dimension_semantics=("arbitrary",)),
    )(t_true, slab, w)

    sdr_loss = out[0]                                  # (S,) per-stage PIT loss (mean over srcs)

    # cross entropy + coefficient weighting stay in plain JAX (trivially cheap, overlaps kernel)
    mmax = jnp.max(logits, axis=-1, keepdims=True)
    lse = mmax[:, 0] + jnp.log(jnp.sum(jnp.exp(logits - mmax), axis=-1))
    cls = lse - logits[:, target_idx]
    coeffs = (jnp.arange(S, dtype=jnp.float32) + 1.0) * (1.0 / S)
    loss = jnp.sum(coeffs * (sdr_loss * n + cls * lamb))
    pos_sdr = -sdr_loss[-1]
    correctness = jnp.argmax(logits[-1]) == target_idx
    return loss, pos_sdr, correctness


def _reference(est_src, logits, src, n_srcs=(2, 3, 4, 5), lamb=0.05):
    """Pure-numpy float64 reference mirroring the PyTorch module semantics."""
    est = np.asarray(est_src, np.float64)
    log = np.asarray(logits, np.float64)
    tgt = np.asarray(src, np.float64)
    S, n, T = est.shape
    target_idx = {m: i for i, m in enumerate(n_srcs)}[n]

    est_zm = est - est.mean(-1, keepdims=True)
    tgt_zm = tgt - tgt.mean(-1, keepdims=True)
    pair_dot = np.einsum("sit,jt->sij", est_zm, tgt_zm)
    tgt_e = np.sum(tgt_zm ** 2, -1)
    scale = pair_dot / (tgt_e[None, None, :] + EPS)
    proj = scale[..., None] * tgt_zm[None, None, :, :]
    e_noise = est_zm[:, :, None, :] - proj
    sdr = np.sum(proj ** 2, -1) / (np.sum(e_noise ** 2, -1) + EPS)
    pw = -10.0 * np.log10(sdr + EPS)                       # (S, n_est, n_tgt)

    best = None
    for perm in permutations(range(n)):
        v = sum(pw[:, perm[i], i] for i in range(n))
        best = v if best is None else np.minimum(best, v)
    sdr_loss = best / n

    m = log.max(-1, keepdims=True)
    lse = m[:, 0] + np.log(np.sum(np.exp(log - m), -1))
    cls = lse - log[:, target_idx]
    coeffs = (np.arange(S) + 1) * (1.0 / S)
    loss = np.sum(coeffs * (sdr_loss * n + cls * lamb))
    pos_sdr = -sdr_loss[-1]
    correct = int(np.argmax(log[-1])) == target_idx
    return loss, pos_sdr, correct


if __name__ == "__main__":
    num_stages, n_src, T = 4, 2, 1920       # T not a 128-multiple -> exercises time padding
    n_srcs = (2, 3, 4, 5)                   # decoder heads -> num_decoders = 4
    lamb = 0.05

    key = jax.random.PRNGKey(0)
    k1, k2, k3 = jax.random.split(key, 3)
    src = jax.random.normal(k1, (n_src, T), jnp.float32)
    noise = 0.3 * jax.random.normal(k2, (num_stages, n_src, T), jnp.float32)
    est_src = src[None, ::-1, :] + noise    # swapped sources so PIT matters
    logits = jax.random.normal(k3, (num_stages, len(n_srcs)), jnp.float32)

    ref_loss, ref_pos_sdr, ref_correct = _reference(
        np.asarray(est_src), np.asarray(logits), np.asarray(src),
        n_srcs=n_srcs, lamb=lamb)

    # default (large tile, single grid step)
    loss, pos_sdr, correct = weighted_pit_loss(est_src, logits, src,
                                               n_srcs=n_srcs, lamb=lamb)
    # small tile -> multi-step streaming accumulation path
    loss2, pos2, corr2 = weighted_pit_loss(est_src, logits, src,
                                           n_srcs=n_srcs, lamb=lamb, t_tile=1024)
    jax.block_until_ready((loss, pos_sdr, correct, loss2, pos2, corr2))

    for lo, ps, co in ((loss, pos_sdr, correct), (loss2, pos2, corr2)):
        np.testing.assert_allclose(float(lo), ref_loss, rtol=2e-3, atol=2e-3)
        np.testing.assert_allclose(float(ps), ref_pos_sdr, rtol=2e-3, atol=2e-3)
        assert bool(co) == ref_correct
    print("KERNEL_OK")
</pallas_src>

<mosaic_0001>
module attributes {stable_mosaic.version = 11 : i64} {
  func.func @_wpit_kernel(%arg0: i32, %arg1: memref<1xi32, #tpu.memory_space<smem>>, %arg2: memref<11x2048xf32, #tpu.memory_space<vmem>>, %arg3: memref<16x2xf32, #tpu.memory_space<vmem>>, %arg4: memref<1x4xf32, #tpu.memory_space<vmem>>, %arg5: memref<11x3xf32, #tpu.memory_space<vmem>>, %arg6: memref<11x1xf32, #tpu.memory_space<vmem>>) attributes {dimension_semantics = [#tpu.dimension_semantics<arbitrary>], iteration_bounds = array<i64: 1>, scalar_prefetch = 1 : i64, scratch_operands = 2 : i64, tpu.core_type = #tpu.core_type<tc>, window_params = [{transform_indices = @transform_0, window_bounds = array<i64: 11, 2048>}, {pipeline_mode = #tpu.pipeline_mode<synchronous>, transform_indices = @transform_1, window_bounds = array<i64: 16, 2>}, {pipeline_mode = #tpu.pipeline_mode<synchronous>, transform_indices = @transform_2, window_bounds = array<i64: 1, 4>}]} {
    %c0_i32 = arith.constant 0 : i32
    %0 = arith.cmpi eq, %arg0, %c0_i32 : i32
    %1 = arith.extui %0 : i1 to i32
    %c0_i32_0 = arith.constant 0 : i32
    %2 = arith.cmpi ne, %1, %c0_i32_0 : i32
    scf.if %2 {
      %cst_13 = arith.constant 0.000000e+00 : f32
      %18 = vector.broadcast %cst_13 : f32 to vector<11x3xf32>
      %c0_14 = arith.constant 0 : index
      %c0_15 = arith.constant 0 : index
      %19 = vector.load %arg5[%c0_14, %c0_15] : memref<11x3xf32, #tpu.memory_space<vmem>>, vector<11x3xf32>
      tpu.vector_store %arg5[%c0_14, %c0_15], %18 {strides = array<i32>} : memref<11x3xf32, #tpu.memory_space<vmem>>, vector<11x3xf32>,
      %cst_16 = arith.constant 0.000000e+00 : f32
      %20 = vector.broadcast %cst_16 : f32 to vector<11x1xf32>
      %c0_17 = arith.constant 0 : index
      %c0_18 = arith.constant 0 : index
      %21 = vector.load %arg6[%c0_17, %c0_18] : memref<11x1xf32, #tpu.memory_space<vmem>>, vector<11x1xf32>
      tpu.vector_store %arg6[%c0_17, %c0_18], %20 {strides = array<i32>} : memref<11x1xf32, #tpu.memory_space<vmem>>, vector<11x1xf32>,
    } else {
    }
    %c0 = arith.constant 0 : index
    %c0_1 = arith.constant 0 : index
    %3 = vector.load %arg2[%c0, %c0_1] : memref<11x2048xf32, #tpu.memory_space<vmem>>, vector<11x2048xf32>
    %4 = vector.extract_strided_slice %3 {offsets = [8, 0], sizes = [3, 2048], strides = [1, 1]} : vector<11x2048xf32> to vector<3x2048xf32>
    %c0_2 = arith.constant 0 : index
    %c0_3 = arith.constant 0 : index
    %5 = vector.load %arg5[%c0_2, %c0_3] : memref<11x3xf32, #tpu.memory_space<vmem>>, vector<11x3xf32>
    %cst = arith.constant dense<0.000000e+00> : vector<11x3xf32>
    %6 = tpu.matmul %3, %4, %cst {dimension_numbers = #tpu.dot_dimension_numbers<[1], [1], [0], [0], [0, 0, 1, 0], [], []>} : vector<11x2048xf32>, vector<3x2048xf32>, vector<11x3xf32> -> vector<11x3xf32>
    %7 = arith.addf %5, %6 : vector<11x3xf32>
    %c0_4 = arith.constant 0 : index
    %c0_5 = arith.constant 0 : index
    %8 = vector.load %arg5[%c0_4, %c0_5] : memref<11x3xf32, #tpu.memory_space<vmem>>, vector<11x3xf32>
    tpu.vector_store %arg5[%c0_4, %c0_5], %7 {strides = array<i32>} : memref<11x3xf32, #tpu.memory_space<vmem>>, vector<11x3xf32>,
    %c0_6 = arith.constant 0 : index
    %c0_7 = arith.constant 0 : index
    %9 = vector.load %arg6[%c0_6, %c0_7] : memref<11x1xf32, #tpu.memory_space<vmem>>, vector<11x1xf32>
    %10 = arith.mulf %3, %3 : vector<11x2048xf32>
    %cst_8 = arith.constant dense<0.000000e+00> : vector<11xf32>
    %11 = vector.multi_reduction <add>, %10, %cst_8 [1] : vector<11x2048xf32> to vector<11xf32>
    %12 = vector.shape_cast %11 : vector<11xf32> to vector<11x1xf32>
    %13 = arith.addf %9, %12 : vector<11x1xf32>
    %c0_9 = arith.constant 0 : index
    %c0_10 = arith.constant 0 : index
    %14 = vector.load %arg6[%c0_9, %c0_10] : memref<11x1xf32, #tpu.memory_space<vmem>>, vector<11x1xf32>
    tpu.vector_store %arg6[%c0_9, %c0_10], %13 {strides = array<i32>} : memref<11x1xf32, #tpu.memory_space<vmem>>, vector<11x1xf32>,
    %c0_i32_11 = arith.constant 0 : i32
    %15 = arith.cmpi eq, %arg0, %c0_i32_11 : i32
    %16 = arith.extui %15 : i1 to i32
    %c0_i32_12 = arith.constant 0 : i32
    %17 = arith.cmpi ne, %16, %c0_i32_12 : i32
    scf.if %17 {
      %c0_13 = arith.constant 0 : index
      %18 = memref.load %arg1[%c0_13] : memref<1xi32, #tpu.memory_space<smem>>
      %19 = arith.sitofp %18 : i32 to f32
      %cst_14 = arith.constant 1.000000e+00 : f32
      %20 = arith.divf %cst_14, %19 : f32
      %c0_15 = arith.constant 0 : index
      %c0_16 = arith.constant 0 : index
      %21 = vector.load %arg5[%c0_15, %c0_16] : memref<11x3xf32, #tpu.memory_space<vmem>>, vector<11x3xf32>
      %c0_17 = arith.constant 0 : index
      %c0_18 = arith.constant 0 : index
      %22 = vector.load %arg6[%c0_17, %c0_18] : memref<11x1xf32, #tpu.memory_space<vmem>>, vector<11x1xf32>
      %23 = vector.extract_strided_slice %21 {offsets = [0, 0], sizes = [8, 2], strides = [1, 1]} : vector<11x3xf32> to vector<8x2xf32>
      %24 = vector.extract_strided_slice %21 {offsets = [0, 2], sizes = [8, 1], strides = [1, 1]} : vector<11x3xf32> to vector<8x1xf32>
      %25 = vector.extract_strided_slice %21 {offsets = [10, 0], sizes = [1, 2], strides = [1, 1]} : vector<11x3xf32> to vector<1x2xf32>
      %26 = vector.extract_strided_slice %22 {offsets = [0, 0], sizes = [8, 1], strides = [1, 1]} : vector<11x1xf32> to vector<8x1xf32>
      %27 = vector.extract_strided_slice %22 {offsets = [8, 0], sizes = [2, 1], strides = [1, 1]} : vector<11x1xf32> to vector<2x1xf32>
      %28 = tpu.iota {dimensions = array<i32: 0>} : vector<2x2xi32>
      %29 = tpu.iota {dimensions = array<i32: 1>} : vector<2x2xi32>
      %30 = arith.cmpi eq, %28, %29 : vector<2x2xi32>
      %31 = arith.extui %30 : vector<2x2xi1> to vector<2x2xi32>
      %32 = arith.sitofp %31 : vector<2x2xi32> to vector<2x2xf32>
      %33 = vector.broadcast %27 : vector<2x1xf32> to vector<2x2xf32>
      %34 = arith.mulf %33, %32 : vector<2x2xf32>
      %cst_19 = arith.constant dense<0.000000e+00> : vector<2xf32>
      %35 = vector.multi_reduction <add>, %34, %cst_19 [0] : vector<2x2xf32> to vector<2xf32>
      %36 = vector.shape_cast %35 : vector<2xf32> to vector<1x2xf32>
      %37 = vector.broadcast %20 : f32 to vector<8x1xf32>
      %38 = arith.mulf %24, %37 : vector<8x1xf32>
      %39 = vector.broadcast %20 : f32 to vector<1x2xf32>
      %40 = arith.mulf %25, %39 : vector<1x2xf32>
      %41 = vector.broadcast %38 : vector<8x1xf32> to vector<8x2xf32>
      %42 = vector.broadcast %40 : vector<1x2xf32> to vector<8x2xf32>
      %43 = arith.mulf %41, %42 : vector<8x2xf32>
      %44 = vector.broadcast %19 : f32 to vector<8x2xf32>
      %45 = arith.mulf %44, %43 : vector<8x2xf32>
      %46 = arith.subf %23, %45 : vector<8x2xf32>
      %47 = arith.mulf %38, %38 : vector<8x1xf32>
      %48 = vector.broadcast %19 : f32 to vector<8x1xf32>
      %49 = arith.mulf %48, %47 : vector<8x1xf32>
      %50 = arith.subf %26, %49 : vector<8x1xf32>
      %51 = arith.mulf %40, %40 : vector<1x2xf32>
      %52 = vector.broadcast %19 : f32 to vector<1x2xf32>
      %53 = arith.mulf %52, %51 : vector<1x2xf32>
      %54 = arith.subf %36, %53 : vector<1x2xf32>
      %cst_20 = arith.constant 9.99999993E-9 : f32
      %55 = vector.broadcast %cst_20 : f32 to vector<1x2xf32>
      %56 = arith.addf %54, %55 : vector<1x2xf32>
      %cst_21 = arith.constant 1.000000e+00 : f32
      %57 = vector.broadcast %cst_21 : f32 to vector<1x2xf32>
      %58 = arith.divf %57, %56 : vector<1x2xf32>
      %59 = vector.broadcast %58 : vector<1x2xf32> to vector<8x2xf32>
      %60 = arith.mulf %46, %59 : vector<8x2xf32>
      %61 = arith.mulf %60, %60 : vector<8x2xf32>
      %62 = vector.broadcast %54 : vector<1x2xf32> to vector<8x2xf32>
      %63 = arith.mulf %61, %62 : vector<8x2xf32>
      %cst_22 = arith.constant 2.000000e+00 : f32
      %64 = vector.broadcast %cst_22 : f32 to vector<8x2xf32>
      %65 = arith.mulf %64, %60 : vector<8x2xf32>
      %66 = arith.mulf %65, %46 : vector<8x2xf32>
      %67 = vector.broadcast %50 : vector<8x1xf32> to vector<8x2xf32>
      %68 = arith.subf %67, %66 : vector<8x2xf32>
      %69 = arith.addf %68, %63 : vector<8x2xf32>
      %cst_23 = arith.constant 0.000000e+00 : f32
      %70 = vector.broadcast %cst_23 : f32 to vector<8x2xf32>
      %71 = arith.maximumf %69, %70 : vector<8x2xf32>
      %cst_24 = arith.constant 9.99999993E-9 : f32
      %72 = vector.broadcast %cst_24 : f32 to vector<8x2xf32>
      %73 = arith.addf %71, %72 : vector<8x2xf32>
      %74 = arith.divf %63, %73 : vector<8x2xf32>
      %cst_25 = arith.constant 9.99999993E-9 : f32
      %75 = vector.broadcast %cst_25 : f32 to vector<8x2xf32>
      %76 = arith.addf %74, %75 : vector<8x2xf32>
      %77 = math.log %76 : vector<8x2xf32>
      %cst_26 = arith.constant -4.34294462 : f32
      %78 = vector.broadcast %cst_26 : f32 to vector<8x2xf32>
      %79 = arith.mulf %78, %77 : vector<8x2xf32>
      %c0_27 = arith.constant 0 : index
      %c0_28 = arith.constant 0 : index
      %80 = vector.load %arg3[%c0_27, %c0_28] : memref<16x2xf32, #tpu.memory_space<vmem>>, vector<16x2xf32>
      %81 = vector.extract_strided_slice %79 {offsets = [0, 0], sizes = [8, 1], strides = [1, 1]} : vector<8x2xf32> to vector<8x1xf32>
      %82 = vector.extract_strided_slice %80 {offsets = [0, 0], sizes = [8, 2], strides = [1, 1]} : vector<16x2xf32> to vector<8x2xf32>
      %83 = vector.broadcast %81 : vector<8x1xf32> to vector<8x2xf32>
      %84 = arith.mulf %83, %82 : vector<8x2xf32>
      %85 = vector.extract_strided_slice %79 {offsets = [0, 1], sizes = [8, 1], strides = [1, 1]} : vector<8x2xf32> to vector<8x1xf32>
      %86 = vector.extract_strided_slice %80 {offsets = [8, 0], sizes = [8, 2], strides = [1, 1]} : vector<16x2xf32> to vector<8x2xf32>
      %87 = vector.broadcast %85 : vector<8x1xf32> to vector<8x2xf32>
      %88 = arith.mulf %87, %86 : vector<8x2xf32>
      %89 = arith.addf %84, %88 : vector<8x2xf32>
      %90 = tpu.iota {dimensions = array<i32: 0>} : vector<8x2xi32>
      %c0_i32_29 = arith.constant 0 : i32
      %91 = vector.broadcast %c0_i32_29 : i32 to vector<8x2xi32>
      %92 = arith.cmpi sge, %90, %91 : vector<8x2xi32>
      %c2_i32 = arith.constant 2 : i32
      %93 = vector.broadcast %c2_i32 : i32 to vector<8x2xi32>
      %94 = arith.cmpi slt, %90, %93 : vector<8x2xi32>
      %95 = arith.andi %92, %94 : vector<8x2xi1>
      %96 = arith.extui %95 : vector<8x2xi1> to vector<8x2xi32>
      %97 = arith.sitofp %96 : vector<8x2xi32> to vector<8x2xf32>
      %98 = arith.mulf %89, %97 : vector<8x2xf32>
      %cst_30 = arith.constant dense<0.000000e+00> : vector<2xf32>
      %99 = vector.multi_reduction <add>, %98, %cst_30 [0] : vector<8x2xf32> to vector<2xf32>
      %100 = vector.shape_cast %99 : vector<2xf32> to vector<1x2xf32>
      %c2_i32_31 = arith.constant 2 : i32
      %101 = vector.broadcast %c2_i32_31 : i32 to vector<8x2xi32>
      %102 = arith.cmpi sge, %90, %101 : vector<8x2xi32>
      %c4_i32 = arith.constant 4 : i32
      %103 = vector.broadcast %c4_i32 : i32 to vector<8x2xi32>
      %104 = arith.cmpi slt, %90, %103 : vector<8x2xi32>
      %105 = arith.andi %102, %104 : vector<8x2xi1>
      %106 = arith.extui %105 : vector<8x2xi1> to vector<8x2xi32>
      %107 = arith.sitofp %106 : vector<8x2xi32> to vector<8x2xf32>
      %108 = arith.mulf %89, %107 : vector<8x2xf32>
      %cst_32 = arith.constant dense<0.000000e+00> : vector<2xf32>
      %109 = vector.multi_reduction <add>, %108, %cst_32 [0] : vector<8x2xf32> to vector<2xf32>
      %110 = vector.shape_cast %109 : vector<2xf32> to vector<1x2xf32>
      %c4_i32_33 = arith.constant 4 : i32
      %111 = vector.broadcast %c4_i32_33 : i32 to vector<8x2xi32>
      %112 = arith.cmpi sge, %90, %111 : vector<8x2xi32>
      %c6_i32 = arith.constant 6 : i32
      %113 = vector.broadcast %c6_i32 : i32 to vector<8x2xi32>
      %114 = arith.cmpi slt, %90, %113 : vector<8x2xi32>
      %115 = arith.andi %112, %114 : vector<8x2xi1>
      %116 = arith.extui %115 : vector<8x2xi1> to vector<8x2xi32>
      %117 = arith.sitofp %116 : vector<8x2xi32> to vector<8x2xf32>
      %118 = arith.mulf %89, %117 : vector<8x2xf32>
      %cst_34 = arith.constant dense<0.000000e+00> : vector<2xf32>
      %119 = vector.multi_reduction <add>, %118, %cst_34 [0] : vector<8x2xf32> to vector<2xf32>
      %120 = vector.shape_cast %119 : vector<2xf32> to vector<1x2xf32>
      %c6_i32_35 = arith.constant 6 : i32
      %121 = vector.broadcast %c6_i32_35 : i32 to vector<8x2xi32>
      %122 = arith.cmpi sge, %90, %121 : vector<8x2xi32>
      %c8_i32 = arith.constant 8 : i32
      %123 = vector.broadcast %c8_i32 : i32 to vector<8x2xi32>
      %124 = arith.cmpi slt, %90, %123 : vector<8x2xi32>
      %125 = arith.andi %122, %124 : vector<8x2xi1>
      %126 = arith.extui %125 : vector<8x2xi1> to vector<8x2xi32>
      %127 = arith.sitofp %126 : vector<8x2xi32> to vector<8x2xf32>
      %128 = arith.mulf %89, %127 : vector<8x2xf32>
      %cst_36 = arith.constant dense<0.000000e+00> : vector<2xf32>
      %129 = vector.multi_reduction <add>, %128, %cst_36 [0] : vector<8x2xf32> to vector<2xf32>
      %130 = vector.shape_cast %129 : vector<2xf32> to vector<1x2xf32>
      %131 = tpu.concatenate %100, %110, %120, %130 in 0 : vector<1x2xf32>, vector<1x2xf32>, vector<1x2xf32>, vector<1x2xf32> -> vector<4x2xf32>
      %cst_37 = arith.constant dense<0x7F800000> : vector<4xf32>
      %132 = vector.multi_reduction <minimumf>, %131, %cst_37 [1] : vector<4x2xf32> to vector<4xf32>
      %133 = vector.shape_cast %132 : vector<4xf32> to vector<4x1xf32>
      %cst_38 = arith.constant 5.000000e-01 : f32
      %134 = vector.broadcast %cst_38 : f32 to vector<4x1xf32>
      %135 = arith.mulf %133, %134 : vector<4x1xf32>
      %136 = tpu.iota {dimensions = array<i32: 0>} : vector<4x4xi32>
      %137 = tpu.iota {dimensions = array<i32: 1>} : vector<4x4xi32>
      %138 = arith.cmpi eq, %136, %137 : vector<4x4xi32>
      %139 = arith.extui %138 : vector<4x4xi1> to vector<4x4xi32>
      %140 = arith.sitofp %139 : vector<4x4xi32> to vector<4x4xf32>
      %141 = vector.broadcast %135 : vector<4x1xf32> to vector<4x4xf32>
      %142 = arith.mulf %141, %140 : vector<4x4xf32>
      %cst_39 = arith.constant dense<0.000000e+00> : vector<4xf32>
      %143 = vector.multi_reduction <add>, %142, %cst_39 [0] : vector<4x4xf32> to vector<4xf32>
      %144 = vector.shape_cast %143 : vector<4xf32> to vector<1x4xf32>
      %c0_40 = arith.constant 0 : index
      %c0_41 = arith.constant 0 : index
      %145 = vector.load %arg4[%c0_40, %c0_41] : memref<1x4xf32, #tpu.memory_space<vmem>>, vector<1x4xf32>
      tpu.vector_store %arg4[%c0_40, %c0_41], %144 {strides = array<i32>} : memref<1x4xf32, #tpu.memory_space<vmem>>, vector<1x4xf32>,
    } else {
    }
    return
  }
  func.func @transform_0(%arg0: i32, %arg1: memref<1xi32, #tpu.memory_space<smem>>) -> (i32, i32) {
    %c0_i32 = arith.constant 0 : i32
    %c0_i32_0 = arith.constant 0 : i32
    return %c0_i32, %arg0 : i32, i32
  }
  func.func @transform_1(%arg0: i32, %arg1: memref<1xi32, #tpu.memory_space<smem>>) -> (i32, i32) {
    %c0_i32 = arith.constant 0 : i32
    %c0_i32_0 = arith.constant 0 : i32
    %c0_i32_1 = arith.constant 0 : i32
    return %c0_i32, %c0_i32_0 : i32, i32
  }
  func.func @transform_2(%arg0: i32, %arg1: memref<1xi32, #tpu.memory_space<smem>>) -> (i32, i32) {
    %c0_i32 = arith.constant 0 : i32
    %c0_i32_0 = arith.constant 0 : i32
    %c0_i32_1 = arith.constant 0 : i32
    return %c0_i32, %c0_i32_0 : i32, i32
  }
}

</mosaic_0001>

<bundles_post_ra>
// kernel: tpu_custom_call.1
= control target key start
LH: loop header
LB: loop body
LE: loop exit
PB: predicated region body
PF: predicated region fallthrough
CT: control target
= control target key end

     0   :  { %9 = vsyncpa [#allocation7], 0  ;;  %s1205_s0 = inlined_call_operand.<no memory space> [shape: s32[1], index: 0, kind: input, shape index: {}]   ;;  %s1206_s1 = inlined_call_operand.hbm [shape: f32[11,2048], index: 1, kind: input, shape index: {}]   ;;  %s1207_s2 = inlined_call_operand.vmem [shape: f32[16,2], index: 2, kind: input, shape index: {}]   ;;  %s1208_s3 = inlined_call_operand.hbm [shape: f32[1,4], index: 3, kind: output, shape index: {}]  }
   0x1   :  { %10 = vsyncpa [#allocation8], 0  ;;  %s1040_s12 = smov [#allocation6]   ;;  %s992_s16 = scalar_lea.hbm %s1206_s1, 4096 }
   0x2   :  { %s16_s13 = sshll.u32 %s1040_s12, 4  ;;  %p993_p0 = scmp.ne.s32.totalorder %s1206_s1, %s992_s16  ;;  %s17_s13 = int_to_ptr.vmem [resolvable:$true] %s16_s13 }
   0x3   :  { %p996_p1 = scmp.lt.u32.totalorder %s992_s16, %s1206_s1 }
   0x5   :  { %p998_p2 = pnand %p996_p1, %p993_p0 }
   0x7   :  { %1001 = shalt.err (!%p998_p2)
}
   0x8   :  { %s1002_s21 = scalar_lea.vmem %s17_s13, 4096  ;;  %p1007_p4 = scmp.lt.s32.totalorder %s17_s13, %s17_s13 }
   0x9   :  { %p1003_p3 = scmp.ne.s32.totalorder %s17_s13, %s1002_s21  ;;  %p1008_p5 = scmp.lt.s32.totalorder %s1002_s21, %s1002_s21 }
   0xb   :  { %p1009_p6 = por %p1008_p5, %p1007_p4 }
   0xd   :  { %p1010_p7 = pnand %p1009_p6, %p1003_p3 }
   0xf   :  { %1013 = shalt.err (!%p1010_p7)
}
  0x10   :  { %s1041_s22 = smov 2048   ;;  %s1042_s23 = smov 128  }
  0x11   :  { %22 = dma.hbm_to_vmem [thread:$0]  %s1206_s1, 4096, %s17_s13, [#allocation7], %s1041_s22, %s1041_s22, %s1042_s23  }
  0x12   :  { %1036 = dma.done.wait [#allocation7], 4096  }
  0x13   :  { %1037 = vsyncadd [#allocation7], 4294963200  ;;  %s775_s28 = scvt.s32.f32 %s1205_s0  ;;  %vm731_vm0 = vcmask 1042432   ;;  %v57_v1 = vld [vmem:[#allocation6 + $0x88] sm:$0x7]  ;;  %v40_v9 = vld [vmem:[#allocation6] sm:$0xff] }
  0x14   :  { %v56_v2 = vld [vmem:[#allocation6 + $0x80] sm:$0x7]  ;;  %v59_v3 = vld [vmem:[#allocation6 + $0x98] sm:$0x7]  ;;  %74 = vmatprep.subr.mxu0 %v57_v1  ;;  %v699_v4 = vmul.f32 %v57_v1, %v57_v1  ;;  %v58_v7 = vld [vmem:[#allocation6 + $0x90] sm:$0x7]  ;;  %v682_v12 = vmul.f32 %v40_v9, %v40_v9 }
  0x15   :  { %v1084_v0 = vstv %s775_s28  ;;  %v698_v5 = vmul.f32 %v56_v2, %v56_v2  ;;  %149 = vmatprep.subr.mxu1 %v59_v3  ;;  %v701_v6 = vmul.f32 %v59_v3, %v59_v3  ;;  %v41_v8 = vld [vmem:[#allocation6 + $0x8] sm:$0xff]  ;;  %75 = vmatpush1.xpose.msra.mxu0 %v56_v2  ;;  %v700_v10 = vmul.f32 %v58_v7, %v58_v7  ;;  %v43_v13 = vld [vmem:[#allocation6 + $0x18] sm:$0xff]  ;;  %v42_v15 = vld [vmem:[#allocation6 + $0x10] sm:$0xff]  ;;  %s1046_s1 = smov 126  }
  0x16   :  { %984 = vrcp.f32 %v1084_v0  ;;  %150 = vmatpush1.xpose.msra.mxu1 %v58_v7  ;;  %v683_v11 = vmul.f32 %v41_v8, %v41_v8  ;;  %v1087_v14 = vld [vmem:[#allocation6 + $0xa8] sm:$0x7]  ;;  %v733_v16 = vsel %vm731_vm0, %v699_v4, 0.0  ;;  %138 = vmatprep.mubr.f32.mxu0 %v41_v8  ;;  %v1091_v18 = vld [vmem:[#allocation6 + $0xa0] sm:$0x7]  ;;  %v685_v22 = vmul.f32 %v43_v13, %v43_v13  ;;  %v47_v38 = vld [vmem:[#allocation6 + $0x38] sm:$0xff] }
  0x17   :  { %v732_v17 = vsel %vm731_vm0, %v698_v5, 0.0  ;;  %213 = vmatprep.mubr.f32.mxu1 %v43_v13  ;;  %v735_v20 = vsel %vm731_vm0, %v700_v10, 0.0  ;;  %224 = vmatprep.subr.mxu0 %v1087_v14  ;;  %v63_v23 = vld [vmem:[#allocation6 + $0xb8] sm:$0x7]  ;;  %v1095_v24 = vld [vmem:[#allocation6 + $0xb0] sm:$0x7]  ;;  %v703_v26 = vmul.f32 %v1087_v14, %v1087_v14  ;;  %v684_v27 = vmul.f32 %v42_v15, %v42_v15 }
  0x18   :  { %v734_v19 = vadd.f32 %v733_v16, %v732_v17  ;;  %v714_v21 = vadd.f32 %v683_v11, %v682_v12  ;;  %v737_v25 = vsel %vm731_vm0, %v701_v6, 0.0  ;;  %139 = vmatmul.mubr.f32.vlgmr.msra.gmra.mrb[0].mxu0 %v40_v9  ;;  %v702_v28 = vmul.f32 %v1091_v18, %v1091_v18  ;;  %v1102_v29 = vld [vmem:[#allocation6 + $0xc8] sm:$0x7]  ;;  %299 = vmatprep.subr.mxu1 %v63_v23  ;;  %v44_v33 = vld [vmem:[#allocation6 + $0x20] sm:$0xff]  ;;  %v1110_v40 = vld [vmem:[#allocation6 + $0xd8] sm:$0x7] }
  0x19   :  { %214 = vmatmul.mubr.f32.vlgmr.msra.gmra.mrb[0].mxu1 %v42_v15  ;;  %225 = vmatpush1.xpose.msra.mxu0 %v1091_v18  ;;  %v704_v32 = vmul.f32 %v1095_v24, %v1095_v24  ;;  %v45_v36 = vld [vmem:[#allocation6 + $0x28] sm:$0xff]  ;;  %v686_v37 = vmul.f32 %v44_v33, %v44_v33  ;;  %v741_v41 = vsel %vm731_vm0, %v703_v26, 0.0  ;;  %v705_v43 = vmul.f32 %v63_v23, %v63_v23  ;;  %v46_v46 = vld [vmem:[#allocation6 + $0x30] sm:$0xff]  ;;  %v1113_v47 = vld [vmem:[#allocation6 + $0xc0] sm:$0x7] }
  0x1a   :  { %v736_v31 = vadd.f32 %v735_v20, %v734_v19  ;;  %v715_v34 = vadd.f32 %v714_v21, %v684_v27  ;;  %v739_v35 = vsel %vm731_vm0, %v702_v28, 0.0  ;;  %143 = vmatprep.mubr.f32.mxu0 %v57_v1  ;;  %300 = vmatpush1.xpose.msra.mxu1 %v1095_v24  ;;  %v687_v44 = vmul.f32 %v45_v36, %v45_v36  ;;  %v66_v53 = vld [vmem:[#allocation6 + $0xd0] sm:$0x7]  ;;  %v1122_v58 = vld [vmem:[#allocation6 + $0xe8] sm:$0x7]  ;;  %v48_v61 = vld [vmem:[#allocation6 + $0x40] sm:$0xff] }
  0x1b   :  { %218 = vmatprep.mubr.f32.mxu1 %v59_v3  ;;  %374 = vmatprep.subr.mxu0 %v1102_v29  ;;  %v743_v48 = vsel %vm731_vm0, %v704_v32, 0.0  ;;  %v688_v50 = vmul.f32 %v46_v46, %v46_v46  ;;  %v706_v51 = vmul.f32 %v1113_v47, %v1113_v47  ;;  %v745_v54 = vsel %vm731_vm0, %v705_v43, 0.0  ;;  %v1124_v59 = vld [vmem:[#allocation6 + $0xf8] sm:$0x7]  ;;  %v50_v11 = vld [vmem:[#allocation6 + $0x50] sm:$0xff] }
  0x1c   :  { %v738_v39 = vadd.f32 %v737_v25, %v736_v31  ;;  %v716_v42 = vadd.f32 %v715_v34, %v685_v22  ;;  %144 = vmatmul.mubr.f32.gmra.mrb[2].mxu0 %v56_v2  ;;  %449 = vmatprep.subr.mxu1 %v1110_v40  ;;  %v707_v56 = vmul.f32 %v1102_v29, %v1102_v29  ;;  %v49_v2 = vld [vmem:[#allocation6 + $0x48] sm:$0xff]  ;;  %v51_v4 = vld [vmem:[#allocation6 + $0x58] sm:$0xff]  ;;  %v68_v12 = vld [vmem:[#allocation6 + $0xe0] sm:$0x7]  ;;  %vm32_vm1 = vcmask 23552  }
  0x1d   :  { %219 = vmatmul.mubr.f32.gmra.mrb[2].mxu1 %v58_v7  ;;  %288 = vmatprep.mubr.f32.mxu0 %v45_v36  ;;  %v689_v57 = vmul.f32 %v47_v38, %v47_v38  ;;  %v747_v63 = vsel %vm731_vm0, %v706_v51, 0.0  ;;  %v708_v1 = vmul.f32 %v66_v53, %v66_v53  ;;  %v690_v3 = vmul.f32 %v48_v61, %v48_v61  ;;  %v70_v19 = vld [vmem:[#allocation6 + $0xf0] sm:$0x7]  ;;  %v53_v25 = vld [vmem:[#allocation6 + $0x68] sm:$0xff]  ;;  %v55_v26 = vld [vmem:[#allocation6 + $0x78] sm:$0xff] }
  0x1e   :  { %v740_v45 = vadd.f32 %v739_v35, %v738_v39  ;;  %363 = vmatprep.mubr.f32.mxu1 %v47_v38  ;;  %v717_v49 = vadd.f32 %v716_v42, %v686_v37  ;;  %v749_v6 = vsel %vm731_vm0, %v707_v56, 0.0  ;;  %v709_v8 = vmul.f32 %v1110_v40, %v1110_v40  ;;  %v54_v34 = vld [vmem:[#allocation6 + $0x70] sm:$0xff] }
  0x1f   :  { %v691_v9 = vmul.f32 %v49_v2, %v49_v2  ;;  %v751_v13 = vsel %vm731_vm0, %v708_v1, 0.0  ;;  %v692_v15 = vmul.f32 %v50_v11, %v50_v11  ;;  %v710_v16 = vmul.f32 %v68_v12, %v68_v12 }
  0x20   :  { %v985_v30 = vpop.eup %984  ;;  %v742_v52 = vadd.f32 %v741_v41, %v740_v45  ;;  %v718_v55 = vadd.f32 %v717_v49, %v687_v44  ;;  %289 = vmatmul.mubr.f32.vlgmr.msra.gmra.mrb[4].mxu0 %v44_v33  ;;  %v753_v20 = vsel %vm731_vm0, %v709_v8, 0.0  ;;  %v693_v22 = vmul.f32 %v51_v4, %v51_v4 }
  0x21   :  { %969 = vpush %v985_v30  ;;  %364 = vmatmul.mubr.f32.vlgmr.msra.gmra.mrb[4].mxu1 %v46_v46  ;;  %375 = vmatpush1.xpose.msra.mxu0 %v1113_v47  ;;  %v712_v27 = vmul.f32 %v70_v19, %v70_v19  ;;  %v755_v28 = vsel %vm731_vm0, %v710_v16, 0.0  ;;  %v713_v32 = vmul.f32 %v1124_v59, %v1124_v59  ;;  %v1043_v49 = vmov 0.0  }
  0x22   :  { %v744_v60 = vadd.f32 %v743_v48, %v742_v52  ;;  %293 = vmatprep.mubr.f32.mxu0 %v1087_v14  ;;  %v719_v62 = vadd.f32 %v718_v55, %v688_v50  ;;  %450 = vmatpush1.xpose.msra.mxu1 %v66_v53  ;;  %v695_v42 = vmul.f32 %v53_v25, %v53_v25  ;;  %vm34_vm2 = vcmask 18432  }
  0x23   :  { %368 = vmatprep.mubr.f32.mxu1 %v63_v23  ;;  %524 = vmatprep.subr.mxu0 %v1122_v58  ;;  %v759_v36 = vsel %vm731_vm0, %v712_v27, 0.0  ;;  %v761_v38 = vsel %vm731_vm0, %v713_v32, 0.0  ;;  %v697_v45 = vmul.f32 %v55_v26, %v55_v26  ;;  %v696_v46 = vmul.f32 %v54_v34, %v54_v34  ;;  %33 = vst.msk [vmem:[#allocation2] sm:$0xff] %vm32_vm1, %v1043_v49 }
  0x24   :  { %v746_v5 = vadd.f32 %v745_v54, %v744_v60  ;;  %599 = vmatprep.subr.mxu1 %v1124_v59  ;;  %v720_v7 = vadd.f32 %v719_v62, %v689_v57  ;;  %294 = vmatmul.mubr.f32.gmra.mrb[6].mxu0 %v1091_v18  ;;  %v711_v18 = vmul.f32 %v1122_v58, %v1122_v58  ;;  %vm38_vm3 = vcmask 2048  }
  0x25   :  { %369 = vmatmul.mubr.f32.gmra.mrb[6].mxu1 %v1095_v24  ;;  %438 = vmatprep.mubr.f32.mxu0 %v49_v2  ;;  %35 = vst.msk [vmem:[#allocation2 + $0x8] sm:$0x7] %vm34_vm2, %v1043_v49  ;;  %v1044_v50 = vmov 2   ;;  %v1045_v51 = vmov 0   ;;  %vm36_vm4 = vcmask 7168   ;;  %vm796_vm6 = vcmask 9216  }
  0x26   :  { %v748_v10 = vadd.f32 %v747_v63, %v746_v5  ;;  %513 = vmatprep.mubr.f32.mxu1 %v51_v4  ;;  %v721_v14 = vadd.f32 %v720_v7, %v690_v3  ;;  %v757_v33 = vsel %vm731_vm0, %v711_v18, 0.0  ;;  %39 = vst.msk [vmem:[#allocation3 + $0x8] sm:$0x7] %vm38_vm3, %v1043_v49  ;;  %981 = vset.pattern.permute.xlu0 %v1044_v50  ;;  %vm881_vm15 = vcmask 15360  }
  0x27   :  { %980 = vset.pattern.permute.xlu1 %v1045_v51  ;;  %37 = vst.msk [vmem:[#allocation3] sm:$0xff] %vm36_vm4, %v1043_v49 }
  0x28   :  { %v750_v17 = vadd.f32 %v749_v6, %v748_v10  ;;  %v722_v21 = vadd.f32 %v721_v14, %v691_v9  ;;  %439 = vmatmul.mubr.f32.vlgmr.msra.gmra.mrb[8].mxu0 %v48_v61 }
  0x29   :  { %514 = vmatmul.mubr.f32.vlgmr.msra.gmra.mrb[8].mxu1 %v50_v11  ;;  %525 = vmatpush1.xpose.msra.mxu0 %v68_v12 }
  0x2a   :  { %v752_v23 = vadd.f32 %v751_v13, %v750_v17  ;;  %443 = vmatprep.mubr.f32.mxu0 %v1102_v29  ;;  %v723_v24 = vadd.f32 %v722_v21, %v692_v15  ;;  %600 = vmatpush1.xpose.msra.mxu1 %v70_v19  ;;  %v52_v29 = vld [vmem:[#allocation6 + $0x60] sm:$0xff] }
  0x2b   :  { %518 = vmatprep.mubr.f32.mxu1 %v1110_v40  ;;  %v694_v41 = vmul.f32 %v52_v29, %v52_v29 }
  0x2c   :  { %v754_v30 = vadd.f32 %v753_v20, %v752_v23  ;;  %v724_v31 = vadd.f32 %v723_v24, %v693_v22  ;;  %444 = vmatmul.mubr.f32.gmra.mrb[10].mxu0 %v1113_v47 }
  0x2d   :  { %519 = vmatmul.mubr.f32.gmra.mrb[10].mxu1 %v66_v53  ;;  %588 = vmatprep.mubr.f32.mxu0 %v53_v25  ;;  %v681_v52 = vld [vmem:[#allocation3 + $0x8] sm:$0x7] }
  0x2e   :  { %663 = vmatprep.mubr.f32.mxu1 %v55_v26  ;;  %v756_v35 = vadd.f32 %v755_v28, %v754_v30  ;;  %v725_v43 = vadd.f32 %v724_v31, %v694_v41  ;;  %v680_v22 = vld [vmem:[#allocation3] sm:$0xff] }
  0x30   :  { %v758_v37 = vadd.f32 %v757_v33, %v756_v35  ;;  %589 = vmatmul.mubr.f32.vlgmr.msra.gmra.mrb[12].mxu0 %v52_v29  ;;  %v726_v44 = vadd.f32 %v725_v43, %v695_v42  ;;  %v73_v42 = vld [vmem:[#allocation2 + $0x8] sm:$0x7] }
  0x31   :  { %664 = vmatmul.mubr.f32.vlgmr.msra.gmra.mrb[12].mxu1 %v54_v34  ;;  %593 = vmatprep.mubr.f32.mxu0 %v1122_v58  ;;  %v72_v34 = vld [vmem:[#allocation2] sm:$0xff] }
  0x32   :  { %668 = vmatprep.mubr.f32.mxu1 %v1124_v59  ;;  %v760_v39 = vadd.f32 %v759_v36, %v758_v37  ;;  %v727_v47 = vadd.f32 %v726_v44, %v696_v46 }
  0x34   :  { %v762_v40 = vadd.f32 %v761_v38, %v760_v39  ;;  %594 = vmatmul.mubr.f32.gmra.mrb[14].mxu0 %v68_v12  ;;  %v728_v48 = vadd.f32 %v727_v47, %v697_v45 }
  0x35   :  { %669 = vmatmul.mubr.f32.gmra.mrb[14].mxu1 %v70_v19 }
  0x36   :  { %763 = vadd.xlane.f32.xlu0 %v762_v40 }
  0x3a   :  { %729 = vadd.xlane.f32.xlu0 %v728_v48 }
  0x52   :  { %s1160_s0 = spop %969 }
  0x53   :  { %v804_v45 = vstv %s1160_s0 }
  0xc3   :  { %v764_v53 = vpop.xlane.xlu0 %763 }
  0xc4   :  { %v766_v54 = vadd.f32 %v764_v53, %v681_v52 }
  0xc6   :  { %770 = vst.msk [vmem:[#allocation3 + $0x8] sm:$0x7] %vm38_vm3, %v766_v54  ;;  %vm933_vm3 = vcmask 11264  }
  0xc7   :  { %v730_v26 = vpop.xlane.xlu0 %729 }
  0xc8   :  { %v765_v28 = vadd.f32 %v730_v26, %v680_v22 }
  0xca   :  { %768 = vst.msk [vmem:[#allocation3] sm:$0xff] %vm36_vm4, %v765_v28  ;;  %vm939_vm4 = vcmask 27648  }
  0xcd   :  { %v782_v51 = vld [vmem:[#allocation3 + $0x8] sm:$0x7] }
  0xd1   :  { %v781_v52 = vld [vmem:[#allocation3] sm:$0xff] }
  0xeb   :  { %v140_v55 = vpop.f32.mrb[0].mxu0 }
  0xec   :  { %v215_v56 = vpop.f32.mrb[0].mxu1  ;;  %v142_v57 = vpop.f32.mrb[1].mxu0 }
  0xed   :  { %v216_v58 = vadd.f32 %v215_v56, %v140_v55  ;;  %v217_v59 = vpop.f32.mrb[1].mxu1  ;;  %v1047_v55 = vmov 1   ;;  %v783_v56 = vlaneseq }
  0xef   :  { %v145_v60 = vpop.f32.mrb[2].mxu0  ;;  %v786_v57 = vand.u32 127, %v783_v56 }
  0xf0   :  { %v220_v61 = vpop.f32.mrb[2].mxu1  ;;  %v147_v62 = vpop.f32.mrb[3].mxu0 }
  0xf1   :  { %v221_v63 = vadd.f32 %v220_v61, %v145_v60  ;;  %v222_v1 = vpop.f32.mrb[3].mxu1 }
  0xf3   :  { %v290_v2 = vpop.f32.mrb[4].mxu0 }
  0xf4   :  { %v365_v3 = vpop.f32.mrb[4].mxu1  ;;  %v291_v4 = vadd.f32 %v290_v2, %v216_v58  ;;  %v292_v5 = vpop.f32.mrb[5].mxu0  ;;  %v1165_v58 = vshrl.u32 %v783_v56, 7 }
  0xf5   :  { %v367_v6 = vpop.f32.mrb[5].mxu1 }
  0xf6   :  { %v366_v7 = vadd.f32 %v365_v3, %v291_v4  ;;  %vm787_vm5 = vcmp.eq.s32.totalorder %v1165_v58, %v786_v57  ;;  %vm889_vm7 = vcmp.ge.s32.totalorder %v1165_v58, 2  ;;  %vm890_vm8 = vcmp.lt.s32.totalorder %v1165_v58, 4 }
  0xf7   :  { %v295_v8 = vpop.f32.mrb[6].mxu0  ;;  %v1169_v59 = vsel %vm787_vm5, 1.0, %v1043_v49  ;;  %vm902_vm9 = vcmp.ge.s32.totalorder %v1165_v58, 4  ;;  %vm903_vm10 = vcmp.lt.s32.totalorder %v1165_v58, 6  ;;  %vm891_vm11 = vmand %vm889_vm7, %vm890_vm8  ;;  %vm876_vm12 = vcmp.lt.s32.totalorder %v1165_v58, 2 }
  0xf8   :  { %v370_v9 = vpop.f32.mrb[6].mxu1  ;;  %v296_v10 = vadd.f32 %v295_v8, %v221_v63  ;;  %v297_v11 = vpop.f32.mrb[7].mxu0  ;;  %vm904_vm13 = vmand %vm902_vm9, %vm903_vm10  ;;  %vm915_vm14 = vcmp.ge.s32.totalorder %v1165_v58, 6  ;;  %vm947_vm5 = vcmask 24576  }
  0xf9   :  { %v372_v12 = vpop.f32.mrb[7].mxu1 }
  0xfa   :  { %v371_v13 = vadd.f32 %v370_v9, %v296_v10  ;;  %v814_v12 = vsub.s32 2, %v1165_v58 }
  0xfb   :  { %v440_v14 = vpop.f32.mrb[8].mxu0 }
  0xfc   :  { %v515_v15 = vpop.f32.mrb[8].mxu1  ;;  %v441_v16 = vadd.f32 %v440_v14, %v366_v7  ;;  %v442_v17 = vpop.f32.mrb[9].mxu0 }
  0xfd   :  { %v517_v19 = vpop.f32.mrb[9].mxu1 }
  0xfe   :  { %v516_v20 = vadd.f32 %v515_v15, %v441_v16 }
  0xff   :  { %v445_v21 = vpop.f32.mrb[10].mxu0 }
 0x100   :  { %v520_v18 = vpop.f32.mrb[10].mxu1  ;;  %v446_v23 = vadd.f32 %v445_v21, %v371_v13  ;;  %v447_v24 = vpop.f32.mrb[11].mxu0 }
 0x101   :  { %v522_v25 = vpop.f32.mrb[11].mxu1 }
 0x102   :  { %v521_v27 = vadd.f32 %v520_v18, %v446_v23 }
 0x103   :  { %v590_v30 = vpop.f32.mrb[12].mxu0 }
 0x104   :  { %v665_v31 = vpop.f32.mrb[12].mxu1  ;;  %v591_v32 = vadd.f32 %v590_v30, %v516_v20  ;;  %v592_v33 = vpop.f32.mrb[13].mxu0 }
 0x105   :  { %v667_v29 = vpop.f32.mrb[13].mxu1 }
 0x106   :  { %v666_v35 = vadd.f32 %v665_v31, %v591_v32 }
 0x107   :  { %v595_v36 = vpop.f32.mrb[14].mxu0 }
 0x108   :  { %v670_v37 = vpop.f32.mrb[14].mxu1  ;;  %v674_v38 = vadd.f32 %v666_v35, %v72_v34  ;;  %v596_v39 = vadd.f32 %v595_v36, %v521_v27  ;;  %v597_v40 = vpop.f32.mrb[15].mxu0 }
 0x109   :  { %v672_v41 = vpop.f32.mrb[15].mxu1 }
 0x10a   :  { %677 = vst.msk [vmem:[#allocation2] sm:$0xff] %vm32_vm1, %v674_v38  ;;  %v671_v43 = vadd.f32 %v670_v37, %v596_v39  ;;  %v861_v37 = vld [vmem:[%s1207_s2] sm:$0xff]  ;;  %v862_v38 = vld [vmem:[%s1207_s2 + $0x8] sm:$0xff]  ;;  %vm928_vm1 = vcmask 1040384   ;;  %s1048_s2 = smov [#allocation9]  }
 0x10b   :  { %s955_s6 = sshll.u32 %s1048_s2, 4  ;;  %s956_s6 = int_to_ptr.vmem [resolvable:$true] %s955_s6 }
 0x10c   :  { %v675_v44 = vadd.f32 %v671_v43, %v73_v42  ;;  %v965_v42 = vsel %vm876_vm12, 1.0, %v1043_v49  ;;  %v966_v43 = vsel %vm891_vm11, 1.0, %v1043_v49  ;;  %s1014_s7 = scalar_lea.vmem %s956_s6, 16  ;;  %s1018_s8 = scalar_lea.vmem %s956_s6, 32 }
 0x10d   :  { %p1015_p8 = scmp.ne.s32.totalorder %s956_s6, %s1014_s7  ;;  %p1019_p9 = scmp.lt.s32.totalorder %s956_s6, %s956_s6 }
 0x10e   :  { %679 = vst.msk [vmem:[#allocation2 + $0x8] sm:$0x7] %vm34_vm2, %v675_v44  ;;  %v967_v44 = vsel %vm904_vm13, 1.0, %v1043_v49  ;;  %vm930_vm2 = vcmask 1041408   ;;  %p1020_p10 = scmp.lt.s32.totalorder %s1018_s8, %s1014_s7 }
 0x110   :  { %p1021_p11 = por %p1020_p10, %p1019_p9 }
 0x111   :  { %v779_v46 = vld [vmem:[#allocation2] sm:$0xff] }
 0x112   :  { %v805_v47 = vmul.f32 %v804_v45, %v779_v46  ;;  %p1022_p12 = pnand %p1021_p11, %p1015_p8 }
 0x114   :  { %v820_v48 = vmul.f32 %v805_v47, %v805_v47  ;;  %809 = vperm.xlu0 %981, %v805_v47  }
 0x115   :  { %v780_v3 = vld [vmem:[#allocation2 + $0x8] sm:$0x7] }
 0x116   :  { %v821_v50 = vmul.f32 %v820_v48, %v1084_v0  ;;  %v806_v5 = vmul.f32 %v804_v45, %v780_v3  ;;  %v968_v45 = vsel %vm915_vm14, 1.0, %v1043_v49 }
 0x118   :  { %823 = vrot.lane.b32.xlu1 %v821_v50, %s1046_s1  ;;  %983 = vset.pattern.permute.xlu0 %v1047_v55  ;;  %v827_v7 = vmul.f32 %v806_v5, %v806_v5  ;;  %v815_v14 = vrot.slane %v806_v5, %v814_v12 }
 0x11a   :  { %v828_v9 = vmul.f32 %v827_v7, %v1084_v0 }
 0x11c   :  { %792 = vperm.xlu1 %980, %v782_v51  }
 0x18a   :  { %v824_v53 = vpop.permute.xlu1 %823 }
 0x18b   :  { %v826_v54 = vsub.f32 %v781_v52, %v824_v53 }
 0x18d   :  { %848 = vperm.xlu1 %980, %v826_v54  }
 0x193   :  { %v810_v13 = vpop.permute.xlu0 %809 }
 0x194   :  { %v816_v15 = vmul.f32 %v815_v14, %v810_v13 }
 0x196   :  { %v818_v17 = vmul.f32 %v816_v15, %v1084_v0 }
 0x198   :  { %v819_v20 = vsub.f32 %v779_v46, %v818_v17 }
 0x19b   :  { %v793_v60 = vpop.permute.xlu1 %792 }
 0x19c   :  { %v795_v61 = vmul.f32 %v1169_v59, %v793_v60 }
 0x19e   :  { %v797_v62 = vsel %vm796_vm6, %v795_v61, 0.0 }
 0x19f   :  { %v798_v63 = vrot.slane %v797_v62, 4 }
 0x1a1   :  { %v799_v1 = vadd.f32 %v798_v63, %v797_v62 }
 0x1a3   :  { %v800_v2 = vrot.slane %v799_v1, 2 }
 0x1a5   :  { %v801_v4 = vadd.f32 %v800_v2, %v799_v1 }
 0x1a7   :  { %v802_v6 = vrot.slane %v801_v4, 1 }
 0x1a9   :  { %v803_v8 = vadd.f32 %v802_v6, %v801_v4 }
 0x1ab   :  { %v829_v10 = vsub.f32 %v803_v8, %v828_v9 }
 0x1ad   :  { %v830_v11 = vadd.f32 1e-08, %v829_v10  ;;  %v842_v23 = vrot.slane %v829_v10, %v814_v12 }
 0x1af   :  { %986 = vrcp.f32 %v830_v11 }
 0x1b9   :  { %v987_v16 = vpop.eup %986 }
 0x1ba   :  { %v836_v19 = vrot.slane %v987_v16, %v814_v12 }
 0x1bc   :  { %v837_v21 = vmul.f32 %v836_v19, %v819_v20 }
 0x1be   :  { %v844_v18 = vmul.f32 2.0, %v837_v21  ;;  %v838_v22 = vmul.f32 %v837_v21, %v837_v21 }
 0x1c0   :  { %v845_v24 = vmul.f32 %v844_v18, %v819_v20  ;;  %v843_v26 = vmul.f32 %v842_v23, %v838_v22 }
 0x20c   :  { %v849_v25 = vpop.permute.xlu1 %848 }
 0x20d   :  { %v851_v27 = vsub.f32 %v849_v25, %v845_v24 }
 0x20f   :  { %v852_v28 = vadd.f32 %v851_v27, %v843_v26 }
 0x211   :  { %v853_v30 = vmax.f32 %v852_v28, 0.0 }
 0x213   :  { %v854_v31 = vadd.f32 1e-08, %v853_v30 }
 0x215   :  { %988 = vrcp.f32 %v854_v31 }
 0x21f   :  { %v989_v32 = vpop.eup %988 }
 0x220   :  { %v856_v33 = vmul.f32 %v989_v32, %v843_v26 }
 0x222   :  { %v857_v29 = vadd.f32 1e-08, %v856_v33 }
 0x224   :  { %990 = vlog2.f32 %v857_v29 }
 0x22e   :  { %v991_v34 = vpop.eup %990 }
 0x22f   :  { %v859_v0 = vmul.f32 0.6931472, %v991_v34 }
 0x231   :  { %v860_v35 = vmul.f32 -4.3429446, %v859_v0 }
 0x233   :  { %865 = vperm.xlu1 %980, %v860_v35  }
 0x237   :  { %982 = vset.pattern.permute.xlu1 %v1047_v55 }
 0x238   :  { %870 = vperm.xlu1 %982, %v860_v35  }
 0x2b2   :  { %v866_v36 = vpop.permute.xlu1 %865 }
 0x2b3   :  { %v868_v40 = vmul.f32 %v866_v36, %v861_v37 }
 0x2b7   :  { %v871_v39 = vpop.permute.xlu1 %870 }
 0x2b8   :  { %v873_v41 = vmul.f32 %v871_v39, %v862_v38 }
 0x2ba   :  { %v874_v46 = vadd.f32 %v873_v41, %v868_v40 }
 0x2bc   :  { %v880_v47 = vmul.f32 %v965_v42, %v874_v46  ;;  %v894_v48 = vmul.f32 %v966_v43, %v874_v46  ;;  %v907_v50 = vmul.f32 %v967_v44, %v874_v46  ;;  %v920_v51 = vmul.f32 %v968_v45, %v874_v46 }
 0x2be   :  { %v882_v52 = vsel %vm881_vm15, %v880_v47, 0.0  ;;  %v895_v53 = vsel %vm881_vm15, %v894_v48, 0.0  ;;  %v908_v54 = vsel %vm881_vm15, %v907_v50, 0.0  ;;  %v921_v55 = vsel %vm881_vm15, %v920_v51, 0.0 }
 0x2bf   :  { %v883_v56 = vrot.slane %v882_v52, 4  ;;  %v896_v57 = vrot.slane %v895_v53, 4  ;;  %v909_v58 = vrot.slane %v908_v54, 4  ;;  %v922_v60 = vrot.slane %v921_v55, 4 }
 0x2c1   :  { %v884_v61 = vadd.f32 %v883_v56, %v882_v52  ;;  %v897_v62 = vadd.f32 %v896_v57, %v895_v53  ;;  %v910_v63 = vadd.f32 %v909_v58, %v908_v54  ;;  %v923_v1 = vadd.f32 %v922_v60, %v921_v55 }
 0x2c3   :  { %v885_v2 = vrot.slane %v884_v61, 2  ;;  %v898_v49 = vrot.slane %v897_v62, 2  ;;  %v911_v3 = vrot.slane %v910_v63, 2  ;;  %v924_v4 = vrot.slane %v923_v1, 2 }
 0x2c5   :  { %v886_v5 = vadd.f32 %v885_v2, %v884_v61  ;;  %v899_v6 = vadd.f32 %v898_v49, %v897_v62  ;;  %v912_v7 = vadd.f32 %v911_v3, %v910_v63  ;;  %v925_v8 = vadd.f32 %v924_v4, %v923_v1 }
 0x2c7   :  { %v887_v9 = vrot.slane %v886_v5, 1  ;;  %v900_v10 = vrot.slane %v899_v6, 1  ;;  %v913_v11 = vrot.slane %v912_v7, 1  ;;  %v926_v12 = vrot.slane %v925_v8, 1 }
 0x2c9   :  { %v888_v13 = vadd.f32 %v887_v9, %v886_v5  ;;  %v901_v14 = vadd.f32 %v900_v10, %v899_v6  ;;  %v914_v15 = vadd.f32 %v913_v11, %v912_v7  ;;  %v927_v16 = vadd.f32 %v926_v12, %v925_v8 }
 0x2cb   :  { %v929_v17 = vsel %vm928_vm1, %v888_v13, %v901_v14 }
 0x2cc   :  { %v931_v19 = vsel %vm930_vm2, %v929_v17, %v914_v15 }
 0x2cd   :  { %v932_v20 = vsel %vm731_vm0, %v931_v19, %v927_v16 }
 0x2ce   :  { %v934_v21 = vsel %vm933_vm3, %v932_v20, inf }
 0x2cf   :  { %935 = vmin.xlane.f32.xlu1 %v934_v21 }
 0x35c   :  { %v936_v18 = vpop.xlane.xlu1 %935 }
 0x35d   :  { %v937_v22 = vmul.f32 0.5, %v936_v18 }
 0x35f   :  { %v938_v23 = vmul.f32 %v1169_v59, %v937_v22 }
 0x361   :  { %v940_v24 = vsel %vm939_vm4, %v938_v23, 0.0 }
 0x362   :  { %v941_v25 = vrot.slane %v940_v24, 4 }
 0x364   :  { %v942_v26 = vadd.f32 %v941_v25, %v940_v24 }
 0x366   :  { %v943_v27 = vrot.slane %v942_v26, 2 }
 0x368   :  { %v944_v28 = vadd.f32 %v943_v27, %v942_v26 }
 0x36a   :  { %v945_v30 = vrot.slane %v944_v28, 1 }
 0x36c   :  { %v946_v31 = vadd.f32 %v945_v30, %v944_v28 }
 0x36e   :  { %948 = vst.msk [vmem:[#allocation9] sm:$0x1] %vm947_vm5, %v946_v31 }
 0x36f   :  { %1025 = shalt.err (!%p1022_p12)
}
 0x370   :  { %s1026_s11 = scalar_lea.hbm %s1208_s3, 16 }
 0x371   :  { %p1027_p13 = scmp.ne.s32.totalorder %s1208_s3, %s1026_s11  ;;  %p1030_p0 = scmp.lt.u32.totalorder %s1026_s11, %s1208_s3 }
 0x373   :  { %p1032_p1 = pnand %p1030_p0, %p1027_p13 }
 0x375   :  { %1035 = shalt.err (!%p1032_p1)
}
 0x376   :  { %958 = dma.vmem_to_hbm [thread:$0]  %s956_s6, 16, %s1208_s3, [#allocation8]  }
 0x377   :  { %1038 = dma.done.wait [#allocation8], 16  }
 0x378   :  { %1039 = vsyncadd [#allocation8], 4294967280 }
 0x379   :  { %962 = vsyncpa [#allocation7], 1 }
 0x37a   :  { %963 = vsyncpa [#allocation8], 1 }

</bundles_post_ra>
